<compile_context>
chip_gen: v6e
topology: v6e:2x2x1
jax: 0.10.0
libtpu: 0.0.40
codegen_flags: <defaults>
</compile_context>

<pallas_src>
import functools

import jax
import jax.numpy as jnp
from jax.experimental import pallas as pl
from jax.experimental.pallas import tpu as pltpu


def _cdiv(a, b):
    return (a + b - 1) // b


def _round_up(x, m):
    return _cdiv(x, m) * m


def _ensemble_actor_kernel(obs_ref, w1_ref, b1_ref, w2_ref, b2_ref,
                           w3_ref, b3_ref, out_ref, *, ensemble_size,
                           act_limit, compute_dtype):
    """One batch tile, ALL ensemble members.

    obs_ref : (tb, d_obs)      -- streamed along the grid, read from HBM once
    w*_ref  : (E, in, out)     -- resident in VMEM across all grid steps
    b*_ref  : (E, 1, out) f32
    out_ref : (E, tb, d_act) f32
    """
    # Cast the obs tile to the matmul dtype inside the kernel: the HBM stream
    # stays at whatever dtype the caller stored (no extra wrapper pass).
    x = obs_ref[...].astype(compute_dtype)

    # E is a small compile-time constant -> Python unroll (full LLO visibility).
    for e in range(ensemble_size):
        # Layer 1: MXU matmul with f32 accumulation; bias + ReLU in f32 on the
        # VPU, down-cast folded into the activation so the tensor feeding the
        # next dot (and any spill of it) is already in the compute dtype.
        h1 = jnp.dot(x, w1_ref[e], preferred_element_type=jnp.float32) + b1_ref[e]
        h1 = jnp.maximum(h1, 0.0).astype(compute_dtype)

        # Layer 2: the FLOP-dominant 256x256 matmul.
        h2 = jnp.dot(h1, w2_ref[e], preferred_element_type=jnp.float32) + b2_ref[e]
        h2 = jnp.maximum(h2, 0.0).astype(compute_dtype)

        # Output layer + tanh (EUP) + act-limit scale, all in f32.
        y = jnp.dot(h2, w3_ref[e], preferred_element_type=jnp.float32) + b3_ref[e]
        out_ref[e] = (act_limit * jnp.tanh(y)).astype(out_ref.dtype)
        # d_act=8 => lane-masked store; only widen/transpose if vst.msk is
        # measured as the binding slot (see header note).


def _choose_tile(B, block_b):
    """Tile the batch with minimal padding; >=2 steps for v7x when B is big."""
    n_tiles = _cdiv(B, block_b)
    # v7x has 2 TensorCores: give Mosaic at least 2 "parallel" grid steps once
    # the batch is big enough to amortize the ~0.35us/step overhead.
    # (v5e/v6e are single-TC; the extra step is harmless there.)
    if B >= 512:
        n_tiles = max(n_tiles, 2)
    tb = _round_up(_cdiv(B, n_tiles), 8)
    return tb, n_tiles


def ensemble_actor_forward(state, params, max_action, *, block_b=1024,
                           compute_dtype=jnp.bfloat16):
    """state: [B, d_obs]; params: w{1,2,3} [E,in,out], b{1,2,3} [E,1,out].

    Returns [E, B, d_act] f32 == torch.stack([max_action * actor(state) ...]).
    `block_b` is the max batch-tile size (sweep 1024->2048/4096 on v6e for
    replay-sized batches); `compute_dtype` is the matmul operand dtype.
    """
    B, d_obs = state.shape
    E, _, H1 = params["w1"].shape
    H2 = params["w2"].shape[2]
    d_act = params["w3"].shape[2]

    tb, n_tiles = _choose_tile(B, block_b)
    B_pad = tb * n_tiles
    if B_pad != B:
        state = jnp.pad(state, ((0, B_pad - B), (0, 0)))

    # Weights are tiny (~0.26 MiB bf16 for E=2, hidden=256) and stay resident,
    # so a one-off cast here is negligible; ideally the caller already stores
    # them in `compute_dtype`.  Biases stay f32 (f32 epilogue, v5e-safe).
    def _w(name):
        w = params[name]
        return w if w.dtype == compute_dtype else w.astype(compute_dtype)

    def _b(name):
        b = params[name]
        return b if b.dtype == jnp.float32 else b.astype(jnp.float32)

    kernel = functools.partial(
        _ensemble_actor_kernel,
        ensemble_size=E,
        act_limit=float(max_action),
        compute_dtype=compute_dtype,
    )

    out = pl.pallas_call(
        kernel,
        out_shape=jax.ShapeDtypeStruct((E, B_pad, d_act), jnp.float32),
        grid=(n_tiles,),
        in_specs=[
            # obs tile streams along the single grid axis: read from HBM once,
            # double-buffered by Pallas so DMA overlaps compute.
            pl.BlockSpec((tb, d_obs), lambda i: (i, 0)),
            # All E weight/bias sets in one full-extent block with a constant
            # index_map -> DMA'd once, resident in VMEM across every tile.
            pl.BlockSpec((E, d_obs, H1), lambda i: (0, 0, 0)),
            pl.BlockSpec((E, 1, H1), lambda i: (0, 0, 0)),
            pl.BlockSpec((E, H1, H2), lambda i: (0, 0, 0)),
            pl.BlockSpec((E, 1, H2), lambda i: (0, 0, 0)),
            pl.BlockSpec((E, H2, d_act), lambda i: (0, 0, 0)),
            pl.BlockSpec((E, 1, d_act), lambda i: (0, 0, 0)),
        ],
        # Distinct (E, tb, d_act) output block per grid step -> no cross-step
        # accumulation semantics; the batch axis stays embarrassingly parallel.
        out_specs=pl.BlockSpec((E, tb, d_act), lambda i: (0, i, 0)),
        compiler_params=pltpu.CompilerParams(
            dimension_semantics=("parallel",),
            # Per-step VMEM (2x obs + 2x out tiles, resident weights, bf16
            # hiddens) is ~2-4 MiB at tb=1024: well under the 32 MiB scoped
            # default everywhere, so no vmem_limit_bytes override is needed.
        ),
    )(state, _w("w1"), _b("b1"), _w("w2"), _b("b2"), _w("w3"), _b("b3"))

    return out[:, :B, :]


def ensemble_actor_sample(state, params, max_action):
    """Mirror of Actor.sample: (actions, log_prob=zeros, actions)."""
    actions = ensemble_actor_forward(state, params, max_action)
    log_prob = jnp.zeros_like(actions)
    return actions, log_prob, actions


def init_params(key, d_obs, hidden, d_act, ensemble_size):
    """PyTorch nn.Linear-style init U(-1/sqrt(fan_in), 1/sqrt(fan_in)), stacked over E."""
    sizes = [d_obs, hidden, hidden, d_act]
    params = {}
    for j in range(len(sizes) - 1):
        fan_in, fan_out = sizes[j], sizes[j + 1]
        key, kw, kb = jax.random.split(key, 3)
        bound = 1.0 / (float(fan_in) ** 0.5)
        # stored as [E, in, out] (transpose of torch's [out, in]) -> x @ W
        params[f"w{j+1}"] = jax.random.uniform(
            kw, (ensemble_size, fan_in, fan_out), jnp.float32, -bound, bound)
        params[f"b{j+1}"] = jax.random.uniform(
            kb, (ensemble_size, 1, fan_out), jnp.float32, -bound, bound)
    return params


def reference_forward(state, params, max_action):
    """Pure-JAX f32 reference (vmapped over the ensemble axis)."""
    def single(w1, b1, w2, b2, w3, b3):
        h = jnp.maximum(state @ w1 + b1, 0.0)
        h = jnp.maximum(h @ w2 + b2, 0.0)
        return max_action * jnp.tanh(h @ w3 + b3)
    return jax.vmap(single)(params["w1"], params["b1"], params["w2"],
                            params["b2"], params["w3"], params["b3"])


if __name__ == "__main__":
    # Small shapes consistent with Actor(d_obs, d_act, max_action, ensemble_size=2):
    # the module fixes hidden widths at 256.
    E = 2
    d_obs = 24
    d_act = 8
    hidden = 256
    max_action = 2.0
    B = 64  # small demo batch; rollout/replay batches (>=512) are the target.

    key = jax.random.PRNGKey(0)
    key, k_obs = jax.random.split(key)
    state = jax.random.normal(k_obs, (B, d_obs), dtype=jnp.float32)
    params = init_params(key, d_obs, hidden, d_act, E)

    ref = reference_forward(state, params, max_action)

    # Default path: bf16 matmul operands, f32 accumulation + f32 epilogue.
    out = jax.block_until_ready(ensemble_actor_forward(state, params, max_action))
    assert out.shape == (E, B, d_act)
    assert jnp.allclose(out, ref, atol=5e-2, rtol=5e-2), "bf16 path mismatch vs reference"

    # Full f32 path (tight tolerance structural check).
    out_f32 = jax.block_until_ready(
        ensemble_actor_forward(state, params, max_action, compute_dtype=jnp.float32))
    assert jnp.allclose(out_f32, ref, atol=1e-4, rtol=1e-4), "f32 path mismatch vs reference"

    # Ragged batch: exercises tile sizing, padding and the slice-off of pad rows.
    B2 = 37
    state2 = jax.random.normal(jax.random.PRNGKey(1), (B2, d_obs), dtype=jnp.float32)
    out2 = jax.block_until_ready(
        ensemble_actor_forward(state2, params, max_action, compute_dtype=jnp.float32))
    ref2 = reference_forward(state2, params, max_action)
    assert out2.shape == (E, B2, d_act)
    assert jnp.allclose(out2, ref2, atol=1e-4, rtol=1e-4), "ragged-batch mismatch vs reference"

    # sample() mirror: (actions, zeros, actions).
    actions, log_prob, actions_again = ensemble_actor_sample(state, params, max_action)
    jax.block_until_ready(actions)
    assert log_prob.shape == actions.shape and float(jnp.abs(log_prob).max()) == 0.0

    print("KERNEL_OK")
</pallas_src>

<mosaic_0001>
module attributes {stable_mosaic.version = 11 : i64} {
  func.func @_ensemble_actor_kernel(%arg0: i32, %arg1: memref<64x24xf32, #tpu.memory_space<vmem>>, %arg2: memref<2x24x256xbf16, #tpu.memory_space<vmem>>, %arg3: memref<2x1x256xf32, #tpu.memory_space<vmem>>, %arg4: memref<2x256x256xbf16, #tpu.memory_space<vmem>>, %arg5: memref<2x1x256xf32, #tpu.memory_space<vmem>>, %arg6: memref<2x256x8xbf16, #tpu.memory_space<vmem>>, %arg7: memref<2x1x8xf32, #tpu.memory_space<vmem>>, %arg8: memref<2x64x8xf32, #tpu.memory_space<vmem>>) attributes {dimension_semantics = [#tpu.dimension_semantics<parallel>], iteration_bounds = array<i64: 1>, scalar_prefetch = 0 : i64, scratch_operands = 0 : i64, tpu.core_type = #tpu.core_type<tc>, window_params = [{transform_indices = @transform_0, window_bounds = array<i64: 64, 24>}, {pipeline_mode = #tpu.pipeline_mode<synchronous>, transform_indices = @transform_1, window_bounds = array<i64: 2, 24, 256>}, {pipeline_mode = #tpu.pipeline_mode<synchronous>, transform_indices = @transform_2, window_bounds = array<i64: 2, 1, 256>}, {pipeline_mode = #tpu.pipeline_mode<synchronous>, transform_indices = @transform_3, window_bounds = array<i64: 2, 256, 256>}, {pipeline_mode = #tpu.pipeline_mode<synchronous>, transform_indices = @transform_4, window_bounds = array<i64: 2, 1, 256>}, {pipeline_mode = #tpu.pipeline_mode<synchronous>, transform_indices = @transform_5, window_bounds = array<i64: 2, 256, 8>}, {pipeline_mode = #tpu.pipeline_mode<synchronous>, transform_indices = @transform_6, window_bounds = array<i64: 2, 1, 8>}, {transform_indices = @transform_7, window_bounds = array<i64: 2, 64, 8>}]} {
    %c0 = arith.constant 0 : index
    %c0_0 = arith.constant 0 : index
    %0 = vector.load %arg1[%c0, %c0_0] : memref<64x24xf32, #tpu.memory_space<vmem>>, vector<64x24xf32>
    %1 = arith.truncf %0 : vector<64x24xf32> to vector<64x24xbf16>
    %c0_1 = arith.constant 0 : index
    %c0_2 = arith.constant 0 : index
    %c0_3 = arith.constant 0 : index
    %2 = vector.load %arg2[%c0_1, %c0_2, %c0_3] : memref<2x24x256xbf16, #tpu.memory_space<vmem>>, vector<1x24x256xbf16>
    %3 = vector.shape_cast %2 : vector<1x24x256xbf16> to vector<24x256xbf16>
    %cst = arith.constant dense<0.000000e+00> : vector<64x256xf32>
    %4 = tpu.matmul %1, %3, %cst {dimension_numbers = #tpu.dot_dimension_numbers<[1], [0], [0], [1], [0, 0, 1, 1], [], []>} : vector<64x24xbf16>, vector<24x256xbf16>, vector<64x256xf32> -> vector<64x256xf32>
    %c0_4 = arith.constant 0 : index
    %c0_5 = arith.constant 0 : index
    %c0_6 = arith.constant 0 : index
    %5 = vector.load %arg3[%c0_4, %c0_5, %c0_6] : memref<2x1x256xf32, #tpu.memory_space<vmem>>, vector<1x1x256xf32>
    %6 = vector.shape_cast %5 : vector<1x1x256xf32> to vector<1x256xf32>
    %7 = vector.broadcast %6 : vector<1x256xf32> to vector<64x256xf32>
    %8 = arith.addf %4, %7 : vector<64x256xf32>
    %cst_7 = arith.constant 0.000000e+00 : f32
    %9 = vector.broadcast %cst_7 : f32 to vector<64x256xf32>
    %10 = arith.maximumf %8, %9 : vector<64x256xf32>
    %11 = arith.truncf %10 : vector<64x256xf32> to vector<64x256xbf16>
    %c0_8 = arith.constant 0 : index
    %c0_9 = arith.constant 0 : index
    %c0_10 = arith.constant 0 : index
    %12 = vector.load %arg4[%c0_8, %c0_9, %c0_10] : memref<2x256x256xbf16, #tpu.memory_space<vmem>>, vector<1x256x256xbf16>
    %13 = vector.shape_cast %12 : vector<1x256x256xbf16> to vector<256x256xbf16>
    %cst_11 = arith.constant dense<0.000000e+00> : vector<64x256xf32>
    %14 = tpu.matmul %11, %13, %cst_11 {dimension_numbers = #tpu.dot_dimension_numbers<[1], [0], [0], [1], [0, 0, 1, 1], [], []>} : vector<64x256xbf16>, vector<256x256xbf16>, vector<64x256xf32> -> vector<64x256xf32>
    %c0_12 = arith.constant 0 : index
    %c0_13 = arith.constant 0 : index
    %c0_14 = arith.constant 0 : index
    %15 = vector.load %arg5[%c0_12, %c0_13, %c0_14] : memref<2x1x256xf32, #tpu.memory_space<vmem>>, vector<1x1x256xf32>
    %16 = vector.shape_cast %15 : vector<1x1x256xf32> to vector<1x256xf32>
    %17 = vector.broadcast %16 : vector<1x256xf32> to vector<64x256xf32>
    %18 = arith.addf %14, %17 : vector<64x256xf32>
    %cst_15 = arith.constant 0.000000e+00 : f32
    %19 = vector.broadcast %cst_15 : f32 to vector<64x256xf32>
    %20 = arith.maximumf %18, %19 : vector<64x256xf32>
    %21 = arith.truncf %20 : vector<64x256xf32> to vector<64x256xbf16>
    %c0_16 = arith.constant 0 : index
    %c0_17 = arith.constant 0 : index
    %c0_18 = arith.constant 0 : index
    %22 = vector.load %arg6[%c0_16, %c0_17, %c0_18] : memref<2x256x8xbf16, #tpu.memory_space<vmem>>, vector<1x256x8xbf16>
    %23 = vector.shape_cast %22 : vector<1x256x8xbf16> to vector<256x8xbf16>
    %cst_19 = arith.constant dense<0.000000e+00> : vector<64x8xf32>
    %24 = tpu.matmul %21, %23, %cst_19 {dimension_numbers = #tpu.dot_dimension_numbers<[1], [0], [0], [1], [0, 0, 1, 1], [], []>} : vector<64x256xbf16>, vector<256x8xbf16>, vector<64x8xf32> -> vector<64x8xf32>
    %c0_20 = arith.constant 0 : index
    %c0_21 = arith.constant 0 : index
    %c0_22 = arith.constant 0 : index
    %25 = vector.load %arg7[%c0_20, %c0_21, %c0_22] : memref<2x1x8xf32, #tpu.memory_space<vmem>>, vector<1x1x8xf32>
    %26 = vector.shape_cast %25 : vector<1x1x8xf32> to vector<1x8xf32>
    %27 = vector.broadcast %26 : vector<1x8xf32> to vector<64x8xf32>
    %28 = arith.addf %24, %27 : vector<64x8xf32>
    %29 = math.tanh %28 : vector<64x8xf32>
    %cst_23 = arith.constant 2.000000e+00 : f32
    %30 = vector.broadcast %cst_23 : f32 to vector<64x8xf32>
    %31 = arith.mulf %30, %29 : vector<64x8xf32>
    %c0_24 = arith.constant 0 : index
    %c0_25 = arith.constant 0 : index
    %c0_26 = arith.constant 0 : index
    %32 = vector.load %arg8[%c0_24, %c0_25, %c0_26] : memref<2x64x8xf32, #tpu.memory_space<vmem>>, vector<1x64x8xf32>
    %33 = vector.shape_cast %32 : vector<1x64x8xf32> to vector<64x8xf32>
    %34 = vector.shape_cast %31 : vector<64x8xf32> to vector<1x64x8xf32>
    tpu.vector_store %arg8[%c0_24, %c0_25, %c0_26], %34 {strides = array<i32>} : memref<2x64x8xf32, #tpu.memory_space<vmem>>, vector<1x64x8xf32>,
    %c1 = arith.constant 1 : index
    %c0_27 = arith.constant 0 : index
    %c0_28 = arith.constant 0 : index
    %35 = vector.load %arg2[%c1, %c0_27, %c0_28] : memref<2x24x256xbf16, #tpu.memory_space<vmem>>, vector<1x24x256xbf16>
    %36 = vector.shape_cast %35 : vector<1x24x256xbf16> to vector<24x256xbf16>
    %cst_29 = arith.constant dense<0.000000e+00> : vector<64x256xf32>
    %37 = tpu.matmul %1, %36, %cst_29 {dimension_numbers = #tpu.dot_dimension_numbers<[1], [0], [0], [1], [0, 0, 1, 1], [], []>} : vector<64x24xbf16>, vector<24x256xbf16>, vector<64x256xf32> -> vector<64x256xf32>
    %c1_30 = arith.constant 1 : index
    %c0_31 = arith.constant 0 : index
    %c0_32 = arith.constant 0 : index
    %38 = vector.load %arg3[%c1_30, %c0_31, %c0_32] : memref<2x1x256xf32, #tpu.memory_space<vmem>>, vector<1x1x256xf32>
    %39 = vector.shape_cast %38 : vector<1x1x256xf32> to vector<1x256xf32>
    %40 = vector.broadcast %39 : vector<1x256xf32> to vector<64x256xf32>
    %41 = arith.addf %37, %40 : vector<64x256xf32>
    %cst_33 = arith.constant 0.000000e+00 : f32
    %42 = vector.broadcast %cst_33 : f32 to vector<64x256xf32>
    %43 = arith.maximumf %41, %42 : vector<64x256xf32>
    %44 = arith.truncf %43 : vector<64x256xf32> to vector<64x256xbf16>
    %c1_34 = arith.constant 1 : index
    %c0_35 = arith.constant 0 : index
    %c0_36 = arith.constant 0 : index
    %45 = vector.load %arg4[%c1_34, %c0_35, %c0_36] : memref<2x256x256xbf16, #tpu.memory_space<vmem>>, vector<1x256x256xbf16>
    %46 = vector.shape_cast %45 : vector<1x256x256xbf16> to vector<256x256xbf16>
    %cst_37 = arith.constant dense<0.000000e+00> : vector<64x256xf32>
    %47 = tpu.matmul %44, %46, %cst_37 {dimension_numbers = #tpu.dot_dimension_numbers<[1], [0], [0], [1], [0, 0, 1, 1], [], []>} : vector<64x256xbf16>, vector<256x256xbf16>, vector<64x256xf32> -> vector<64x256xf32>
    %c1_38 = arith.constant 1 : index
    %c0_39 = arith.constant 0 : index
    %c0_40 = arith.constant 0 : index
    %48 = vector.load %arg5[%c1_38, %c0_39, %c0_40] : memref<2x1x256xf32, #tpu.memory_space<vmem>>, vector<1x1x256xf32>
    %49 = vector.shape_cast %48 : vector<1x1x256xf32> to vector<1x256xf32>
    %50 = vector.broadcast %49 : vector<1x256xf32> to vector<64x256xf32>
    %51 = arith.addf %47, %50 : vector<64x256xf32>
    %cst_41 = arith.constant 0.000000e+00 : f32
    %52 = vector.broadcast %cst_41 : f32 to vector<64x256xf32>
    %53 = arith.maximumf %51, %52 : vector<64x256xf32>
    %54 = arith.truncf %53 : vector<64x256xf32> to vector<64x256xbf16>
    %c1_42 = arith.constant 1 : index
    %c0_43 = arith.constant 0 : index
    %c0_44 = arith.constant 0 : index
    %55 = vector.load %arg6[%c1_42, %c0_43, %c0_44] : memref<2x256x8xbf16, #tpu.memory_space<vmem>>, vector<1x256x8xbf16>
    %56 = vector.shape_cast %55 : vector<1x256x8xbf16> to vector<256x8xbf16>
    %cst_45 = arith.constant dense<0.000000e+00> : vector<64x8xf32>
    %57 = tpu.matmul %54, %56, %cst_45 {dimension_numbers = #tpu.dot_dimension_numbers<[1], [0], [0], [1], [0, 0, 1, 1], [], []>} : vector<64x256xbf16>, vector<256x8xbf16>, vector<64x8xf32> -> vector<64x8xf32>
    %c1_46 = arith.constant 1 : index
    %c0_47 = arith.constant 0 : index
    %c0_48 = arith.constant 0 : index
    %58 = vector.load %arg7[%c1_46, %c0_47, %c0_48] : memref<2x1x8xf32, #tpu.memory_space<vmem>>, vector<1x1x8xf32>
    %59 = vector.shape_cast %58 : vector<1x1x8xf32> to vector<1x8xf32>
    %60 = vector.broadcast %59 : vector<1x8xf32> to vector<64x8xf32>
    %61 = arith.addf %57, %60 : vector<64x8xf32>
    %62 = math.tanh %61 : vector<64x8xf32>
    %cst_49 = arith.constant 2.000000e+00 : f32
    %63 = vector.broadcast %cst_49 : f32 to vector<64x8xf32>
    %64 = arith.mulf %63, %62 : vector<64x8xf32>
    %c1_50 = arith.constant 1 : index
    %c0_51 = arith.constant 0 : index
    %c0_52 = arith.constant 0 : index
    %65 = vector.load %arg8[%c1_50, %c0_51, %c0_52] : memref<2x64x8xf32, #tpu.memory_space<vmem>>, vector<1x64x8xf32>
    %66 = vector.shape_cast %65 : vector<1x64x8xf32> to vector<64x8xf32>
    %67 = vector.shape_cast %64 : vector<64x8xf32> to vector<1x64x8xf32>
    tpu.vector_store %arg8[%c1_50, %c0_51, %c0_52], %67 {strides = array<i32>} : memref<2x64x8xf32, #tpu.memory_space<vmem>>, vector<1x64x8xf32>,
    return
  }
  func.func @transform_0(%arg0: i32) -> (i32, i32) {
    %c0_i32 = arith.constant 0 : i32
    %c0_i32_0 = arith.constant 0 : i32
    return %arg0, %c0_i32 : i32, i32
  }
  func.func @transform_1(%arg0: i32) -> (i32, i32, i32) {
    %c0_i32 = arith.constant 0 : i32
    %c0_i32_0 = arith.constant 0 : i32
    %c0_i32_1 = arith.constant 0 : i32
    %c0_i32_2 = arith.constant 0 : i32
    return %c0_i32, %c0_i32_0, %c0_i32_1 : i32, i32, i32
  }
  func.func @transform_2(%arg0: i32) -> (i32, i32, i32) {
    %c0_i32 = arith.constant 0 : i32
    %c0_i32_0 = arith.constant 0 : i32
    %c0_i32_1 = arith.constant 0 : i32
    %c0_i32_2 = arith.constant 0 : i32
    return %c0_i32, %c0_i32_0, %c0_i32_1 : i32, i32, i32
  }
  func.func @transform_3(%arg0: i32) -> (i32, i32, i32) {
    %c0_i32 = arith.constant 0 : i32
    %c0_i32_0 = arith.constant 0 : i32
    %c0_i32_1 = arith.constant 0 : i32
    %c0_i32_2 = arith.constant 0 : i32
    return %c0_i32, %c0_i32_0, %c0_i32_1 : i32, i32, i32
  }
  func.func @transform_4(%arg0: i32) -> (i32, i32, i32) {
    %c0_i32 = arith.constant 0 : i32
    %c0_i32_0 = arith.constant 0 : i32
    %c0_i32_1 = arith.constant 0 : i32
    %c0_i32_2 = arith.constant 0 : i32
    return %c0_i32, %c0_i32_0, %c0_i32_1 : i32, i32, i32
  }
  func.func @transform_5(%arg0: i32) -> (i32, i32, i32) {
    %c0_i32 = arith.constant 0 : i32
    %c0_i32_0 = arith.constant 0 : i32
    %c0_i32_1 = arith.constant 0 : i32
    %c0_i32_2 = arith.constant 0 : i32
    return %c0_i32, %c0_i32_0, %c0_i32_1 : i32, i32, i32
  }
  func.func @transform_6(%arg0: i32) -> (i32, i32, i32) {
    %c0_i32 = arith.constant 0 : i32
    %c0_i32_0 = arith.constant 0 : i32
    %c0_i32_1 = arith.constant 0 : i32
    %c0_i32_2 = arith.constant 0 : i32
    return %c0_i32, %c0_i32_0, %c0_i32_1 : i32, i32, i32
  }
  func.func @transform_7(%arg0: i32) -> (i32, i32, i32) {
    %c0_i32 = arith.constant 0 : i32
    %c0_i32_0 = arith.constant 0 : i32
    %c0_i32_1 = arith.constant 0 : i32
    return %c0_i32, %arg0, %c0_i32_0 : i32, i32, i32
  }
}

</mosaic_0001>

<bundles_post_ra>
// kernel: tpu_custom_call.1
= control target key start
LH: loop header
LB: loop body
LE: loop exit
PB: predicated region body
PF: predicated region fallthrough
CT: control target
= control target key end

     0   :  { %12 = vsyncpa [#allocation3], 0  ;;  %s1834_s24 = smov [#allocation2]   ;;  %s2179_s0 = inlined_call_operand.vmem [shape: f32[64,24], index: 0, kind: input, shape index: {}]   ;;  %s2180_s1 = inlined_call_operand.vmem [shape: bf16[2,24,256], index: 1, kind: input, shape index: {}]   ;;  %s2181_s2 = inlined_call_operand.vmem [shape: f32[2,1,256], index: 2, kind: input, shape index: {}]   ;;  %s2182_s3 = inlined_call_operand.hbm [shape: bf16[2,256,256], index: 3, kind: input, shape index: {}]   ;;  %s2183_s4 = inlined_call_operand.vmem [shape: f32[2,1,256], index: 4, kind: input, shape index: {}]   ;;  %s2184_s5 = inlined_call_operand.vmem [shape: bf16[2,256,8], index: 5, kind: input, shape index: {}]   ;;  %s2185_s6 = inlined_call_operand.vmem [shape: f32[2,1,8], index: 6, kind: input, shape index: {}]   ;;  %s2186_s7 = inlined_call_operand.vmem [shape: f32[2,64,8], index: 7, kind: output, shape index: {}]  }
   0x1   :  { %s24_s25 = sshll.u32 %s1834_s24, 4  ;;  %s25_s25 = int_to_ptr.vmem [resolvable:$true] %s24_s25 }
   0x2   :  { %s1820_s26 = scalar_lea.vmem %s25_s25, 8192  ;;  %p1825_p1 = scmp.lt.s32.totalorder %s25_s25, %s25_s25 }
   0x3   :  { %p1821_p0 = scmp.ne.s32.totalorder %s25_s25, %s1820_s26  ;;  %p1826_p2 = scmp.lt.s32.totalorder %s1820_s26, %s1820_s26 }
   0x5   :  { %p1827_p3 = por %p1826_p2, %p1825_p1 }
   0x7   :  { %p1828_p4 = pnand %p1827_p3, %p1821_p0 }
   0x9   :  { %1831 = shalt.err (!%p1828_p4)
}
   0xa   :  { %s1835_s27 = smov 128   ;;  %s1836_s28 = smov 8  }
   0xb   :  { %30 = dma.hbm_to_vmem [thread:$0]  %s2182_s3, 8192, %s25_s25, [#allocation3], %s1835_s27, %s1835_s27, %s1836_s28  }
   0xc   :  { %1832 = dma.done.wait [#allocation3], 8192  }
   0xd   :  { %1833 = vsyncadd [#allocation3], 4294959104  ;;  %v1837_v0 = vmov 0   ;;  %v55_v1 = vld [vmem:[%s2180_s1 + $0x10] sm:$0xff]  ;;  %vm96_vm0 = vcmask 1043456   ;;  %v41_v7 = vld [vmem:[%s2179_s0] sm:$0xff]  ;;  %v58_v61 = vlaneseq }
   0xe   :  { %135 = vmatprep.mubr.bf16.mxu0 %v1837_v0  ;;  %v1399_v2 = vcombine.high %v55_v1, %v55_v1  ;;  %v1398_v3 = vcombine.low %v55_v1, %v55_v1  ;;  %v1644_v4 = vld [vmem:[%s2180_s1 + $0x4] ss:$8 sps:$4 sm:$0xff]   ;;  %v1646_v6 = vld [vmem:[%s2180_s1] ss:$8 sps:$4 sm:$0xff]   ;;  %v1647_v9 = vld [vmem:[#allocation2 + $0x74] ss:$8 sps:$4 sm:$0xff]  }
   0xf   :  { %v42_v8 = vld [vmem:[%s2179_s0 + $0x8] sm:$0xff]  ;;  %v1649_v10 = vld [vmem:[#allocation2 + $0x70] ss:$8 sps:$4 sm:$0xff]   ;;  %404 = vmatprep.subr.bf16.mxu1 %v1647_v9  ;;  %vm83_vm1 = vcmask 195584   ;;  %v1653_v14 = vld [vmem:[#allocation2 + $0x54] ss:$8 sps:$4 sm:$0xff]  }
  0x10   :  { %1400 = vmatprep.subr.msk.bf16.mxu0 %vm96_vm0, %v1399_v2  ;;  %v98_v5 = vsel %vm96_vm0, %v1398_v3, 0  ;;  %v1650_v11 = vld [vmem:[#allocation2 + $0x64] ss:$8 sps:$4 sm:$0xff]   ;;  %v1899_v12 = vpack.c.bf16 %v42_v8, %v41_v7  ;;  %405 = vmatpush1.bf16.msra.mxu1 %v1649_v10  ;;  %v1652_v13 = vld [vmem:[#allocation2 + $0x60] ss:$8 sps:$4 sm:$0xff]   ;;  %v43_v15 = vld [vmem:[%s2179_s0 + $0x10] sm:$0xff] }
  0x11   :  { %116 = vmatpush1.bf16.msra.mxu0 %v98_v5  ;;  %406 = vmatprep.subr.bf16.mxu1 %v1650_v11  ;;  %v44_v16 = vld [vmem:[%s2179_s0 + $0x18] sm:$0xff]  ;;  %v1656_v18 = vld [vmem:[#allocation2 + $0x44] ss:$8 sps:$4 sm:$0xff]   ;;  %v1658_v20 = vld [vmem:[#allocation2 + $0x40] ss:$8 sps:$4 sm:$0xff]   ;;  %v59_v62 = vshrl.u32 %v58_v61, 7 }
  0x12   :  { %117 = vmatprep.subr.bf16.mxu0 %v1644_v4  ;;  %v1655_v17 = vld [vmem:[#allocation2 + $0x50] ss:$8 sps:$4 sm:$0xff]   ;;  %v1910_v19 = vpack.c.bf16 %v44_v16, %v43_v15  ;;  %v1659_v21 = vld [vmem:[#allocation2 + $0x34] ss:$8 sps:$4 sm:$0xff]   ;;  %v45_v22 = vld [vmem:[%s2179_s0 + $0x20] sm:$0xff]  ;;  %vm717_vm2 = vcmask 64512  }
  0x13   :  { %v46_v23 = vld [vmem:[%s2179_s0 + $0x28] sm:$0xff]  ;;  %v1661_v24 = vld [vmem:[#allocation2 + $0x30] ss:$8 sps:$4 sm:$0xff]   ;;  %v1665_v28 = vld [vmem:[#allocation2 + $0x14] ss:$8 sps:$4 sm:$0xff]   ;;  %v1966_v63 = vsub.s32 1, %v59_v62 }
  0x14   :  { %407 = vmatpush1.bf16.msra.mxu1 %v1652_v13  ;;  %v1662_v25 = vld [vmem:[#allocation2 + $0x24] ss:$8 sps:$4 sm:$0xff]   ;;  %v1664_v26 = vld [vmem:[#allocation2 + $0x20] ss:$8 sps:$4 sm:$0xff]   ;;  %v1921_v27 = vpack.c.bf16 %v46_v23, %v45_v22  ;;  %v47_v29 = vld [vmem:[%s2179_s0 + $0x30] sm:$0xff]  ;;  %v1968_v1 = vsub.s32 0, %v59_v62 }
  0x15   :  { %118 = vmatpush1.bf16.msra.mxu0 %v1646_v6  ;;  %408 = vmatprep.subr.bf16.mxu1 %v1653_v14  ;;  %v48_v30 = vld [vmem:[%s2179_s0 + $0x38] sm:$0xff]  ;;  %v1668_v32 = vld [vmem:[#allocation2 + $0x4] ss:$8 sps:$4 sm:$0xff]   ;;  %v1670_v33 = vld [vmem:[#allocation2] ss:$8 sps:$4 sm:$0xff]  }
  0x16   :  { %v1667_v31 = vld [vmem:[#allocation2 + $0x10] ss:$8 sps:$4 sm:$0xff]   ;;  %v1932_v34 = vpack.c.bf16 %v48_v30, %v47_v29  ;;  %v1671_v35 = vld [vmem:[#allocation2 + $0xf4] ss:$8 sps:$4 sm:$0xff]   ;;  %v1674_v37 = vld [vmem:[#allocation2 + $0xe4] ss:$8 sps:$4 sm:$0xff]  }
  0x17   :  { %v1673_v36 = vld [vmem:[#allocation2 + $0xf0] ss:$8 sps:$4 sm:$0xff]   ;;  %v1676_v38 = vld [vmem:[#allocation2 + $0xe0] ss:$8 sps:$4 sm:$0xff]   ;;  %v1677_v39 = vld [vmem:[#allocation2 + $0xd4] ss:$8 sps:$4 sm:$0xff]  }
  0x18   :  { %1401 = vmatmul.mubr.msk.bf16.vlgmr.msra.gmra.mxu0 %vm83_vm1, %v1899_v12  ;;  %409 = vmatpush1.bf16.msra.mxu1 %v1655_v17  ;;  %v1679_v40 = vld [vmem:[#allocation2 + $0xd0] ss:$8 sps:$4 sm:$0xff]   ;;  %v1680_v41 = vld [vmem:[#allocation2 + $0xc4] ss:$8 sps:$4 sm:$0xff]   ;;  %v1682_v42 = vld [vmem:[#allocation2 + $0xc0] ss:$8 sps:$4 sm:$0xff]  }
  0x19   :  { %145 = vmatprep.mubr.bf16.mxu0 %v1837_v0  ;;  %410 = vmatprep.subr.bf16.mxu1 %v1656_v18  ;;  %v1683_v43 = vld [vmem:[#allocation2 + $0xb4] ss:$8 sps:$4 sm:$0xff]   ;;  %v1685_v44 = vld [vmem:[#allocation2 + $0xb0] ss:$8 sps:$4 sm:$0xff]   ;;  %v1686_v45 = vld [vmem:[#allocation2 + $0xa4] ss:$8 sps:$4 sm:$0xff]  }
  0x1a   :  { %v1688_v46 = vld [vmem:[#allocation2 + $0xa0] ss:$8 sps:$4 sm:$0xff]   ;;  %v1689_v47 = vld [vmem:[#allocation2 + $0x94] ss:$8 sps:$4 sm:$0xff]   ;;  %v1691_v48 = vld [vmem:[#allocation2 + $0x90] ss:$8 sps:$4 sm:$0xff]  }
  0x1b   :  { %v1692_v49 = vld [vmem:[#allocation2 + $0x84] ss:$8 sps:$4 sm:$0xff]   ;;  %v1694_v50 = vld [vmem:[#allocation2 + $0x80] ss:$8 sps:$4 sm:$0xff]   ;;  %v1695_v51 = vld [vmem:[%s2184_s5 + $0x78] sm:$0xff]  }
  0x1c   :  { %411 = vmatpush1.bf16.msra.mxu1 %v1658_v20  ;;  %v1696_v52 = vld [vmem:[%s2184_s5 + $0x38] sm:$0xff]   ;;  %v1697_v53 = vld [vmem:[%s2184_s5 + $0x70] sm:$0xff]   ;;  %1558 = vmatprep.subr.bf16.mxu0 %v1695_v51  ;;  %v1699_v55 = vld [vmem:[%s2184_s5 + $0x68] sm:$0xff]  }
  0x1d   :  { %412 = vmatprep.subr.bf16.mxu1 %v1659_v21  ;;  %1559 = vmatpush3.bf16.msra.mxu0 %v1696_v52  ;;  %v1698_v54 = vld [vmem:[%s2184_s5 + $0x30] sm:$0xff]   ;;  %v1700_v56 = vld [vmem:[%s2184_s5 + $0x28] sm:$0xff]   ;;  %v1701_v57 = vld [vmem:[%s2184_s5 + $0x60] sm:$0xff]  }
  0x1e   :  { %1560 = vmatprep.subr.bf16.mxu0 %v1697_v53  ;;  %v1702_v58 = vld [vmem:[%s2184_s5 + $0x20] sm:$0xff]   ;;  %v1703_v59 = vld [vmem:[%s2184_s5 + $0x58] sm:$0xff]  }
  0x1f   :  { %v1704_v60 = vld [vmem:[%s2184_s5 + $0x18] sm:$0xff]   ;;  %v56_v2 = vld [vmem:[%s2181_s2] sm:$0x3] }
  0x20   :  { %1402 = vmatmul.mubr.msk.bf16.gmra.mxu0 %vm83_vm1, %v1910_v19  ;;  %413 = vmatpush1.bf16.msra.mxu1 %v1661_v24  ;;  %v65_v4 = vrot.slane %v56_v2, %v1966_v63  ;;  %v61_v5 = vrot.slane %v56_v2, %v1968_v1 }
  0x21   :  { %155 = vmatprep.mubr.bf16.mxu0 %v1837_v0  ;;  %414 = vmatprep.subr.bf16.mxu1 %v1662_v25 }
  0x22   :  { %1561 = vmatpush3.bf16.msra.mxu0 %v1698_v54 }
  0x23   :  { %1562 = vmatprep.subr.bf16.mxu0 %v1699_v55 }
  0x24   :  { %415 = vmatpush1.bf16.msra.mxu1 %v1664_v26 }
  0x25   :  { %416 = vmatprep.subr.bf16.mxu1 %v1665_v28 }
  0x26   :  { %1563 = vmatpush3.bf16.msra.mxu0 %v1700_v56 }
  0x27   :  { %1564 = vmatprep.subr.bf16.mxu0 %v1701_v57 }
  0x28   :  { %1403 = vmatmul.mubr.msk.bf16.gmra.mxu0 %vm83_vm1, %v1921_v27  ;;  %417 = vmatpush1.bf16.msra.mxu1 %v1667_v31 }
  0x29   :  { %165 = vmatprep.mubr.bf16.mxu0 %v1837_v0  ;;  %418 = vmatprep.subr.bf16.mxu1 %v1668_v32 }
  0x2a   :  { %1565 = vmatpush3.bf16.msra.mxu0 %v1702_v58 }
  0x2b   :  { %1566 = vmatprep.subr.bf16.mxu0 %v1703_v59 }
  0x2c   :  { %419 = vmatpush1.bf16.msra.mxu1 %v1670_v33 }
  0x2d   :  { %420 = vmatprep.subr.bf16.mxu1 %v1671_v35 }
  0x2e   :  { %1567 = vmatpush3.bf16.msra.mxu0 %v1704_v60 }
  0x30   :  { %1404 = vmatmul.mubr.msk.bf16.gmra.mxu0 %vm83_vm1, %v1932_v34  ;;  %421 = vmatpush2.bf16.msra.mxu1 %v1673_v36 }
  0x31   :  { %422 = vmatprep.subr.bf16.mxu1 %v1674_v37 }
  0x34   :  { %423 = vmatpush2.bf16.msra.mxu1 %v1676_v38 }
  0x35   :  { %424 = vmatprep.subr.bf16.mxu1 %v1677_v39 }
  0x38   :  { %425 = vmatpush2.bf16.msra.mxu1 %v1679_v40 }
  0x39   :  { %426 = vmatprep.subr.bf16.mxu1 %v1680_v41 }
  0x3c   :  { %427 = vmatpush2.bf16.msra.mxu1 %v1682_v42 }
  0x3d   :  { %428 = vmatprep.subr.bf16.mxu1 %v1683_v43 }
  0x40   :  { %429 = vmatpush2.bf16.msra.mxu1 %v1685_v44 }
  0x41   :  { %430 = vmatprep.subr.bf16.mxu1 %v1686_v45 }
  0x44   :  { %431 = vmatpush2.bf16.msra.mxu1 %v1688_v46 }
  0x45   :  { %432 = vmatprep.subr.bf16.mxu1 %v1689_v47 }
  0x48   :  { %433 = vmatpush2.bf16.msra.mxu1 %v1691_v48 }
  0x49   :  { %434 = vmatprep.subr.bf16.mxu1 %v1692_v49 }
  0x4c   :  { %435 = vmatpush2.bf16.msra.mxu1 %v1694_v50 }
  0xd8   :  { %v137_v3 = vpop.f32.mrf.mxu0 }
  0xd9   :  { %v138_v10 = vadd.f32 %v137_v3, %v61_v5 }
  0xda   :  { %v139_v6 = vpop.f32.mrf.mxu0 }
  0xdb   :  { %v140_v8 = vadd.f32 %v139_v6, %v65_v4  ;;  %v176_v18 = vmax.f32 %v138_v10, 0.0  ;;  %v1705_v6 = vld [vmem:[%s2184_s5 + $0x50] sm:$0xff]   ;;  %v1456_v10 = vld [vmem:[%s2180_s1 + $0x28] sm:$0xff] }
  0xdc   :  { %v141_v7 = vpop.f32.mrf.mxu0  ;;  %1568 = vmatprep.subr.bf16.mxu0 %v1705_v6 }
  0xdd   :  { %v142_v9 = vadd.f32 %v141_v7, %v61_v5  ;;  %v177_v16 = vmax.f32 %v140_v8, 0.0  ;;  %v1706_v7 = vld [vmem:[%s2184_s5 + $0x10] sm:$0xff]   ;;  %v1709_v8 = vld [vmem:[%s2184_s5 + $0x40] sm:$0xff]  }
  0xde   :  { %v143_v11 = vpop.f32.mrf.mxu0  ;;  %1569 = vmatpush3.bf16.msra.mxu0 %v1706_v7 }
  0xdf   :  { %v144_v13 = vadd.f32 %v143_v11, %v65_v4  ;;  %v178_v14 = vmax.f32 %v142_v9, 0.0  ;;  %v1710_v9 = vld [vmem:[%s2184_s5] sm:$0xff]   ;;  %v1461_v11 = vcombine.high %v1456_v10, %v1456_v10 }
  0xe0   :  { %v147_v15 = vpop.f32.mrf.mxu0 }
  0xe1   :  { %v179_v17 = vmax.f32 %v144_v13, 0.0  ;;  %v192_v22 = vpack.c.bf16 %v178_v14, %v176_v18  ;;  %v148_v26 = vadd.f32 %v147_v15, %v61_v5  ;;  %v1716_v13 = vld [vmem:[#allocation2 + $0x170] ss:$8 sps:$4 sm:$0xff]   ;;  %v1718_v14 = vld [vmem:[#allocation2 + $0x174] ss:$8 sps:$4 sm:$0xff]  }
  0xe2   :  { %v149_v20 = vpop.f32.mrf.mxu0  ;;  %v1721_v15 = vld [vmem:[#allocation2 + $0x164] ss:$8 sps:$4 sm:$0xff]   ;;  %1067 = vmatprep.subr.bf16.mxu1 %v1718_v14  ;;  %v1722_v18 = vld [vmem:[#allocation2 + $0x150] ss:$8 sps:$4 sm:$0xff]  }
  0xe3   :  { %v193_v21 = vpack.c.bf16 %v179_v17, %v177_v16  ;;  %v150_v24 = vadd.f32 %v149_v20, %v65_v4  ;;  %v180_v35 = vmax.f32 %v148_v26, 0.0  ;;  %v1719_v16 = vld [vmem:[#allocation2 + $0x160] ss:$8 sps:$4 sm:$0xff]   ;;  %v1724_v17 = vld [vmem:[#allocation2 + $0x154] ss:$8 sps:$4 sm:$0xff]  }
  0xe4   :  { %v151_v23 = vpop.f32.mrf.mxu0  ;;  %v1727_v20 = vld [vmem:[#allocation2 + $0x144] ss:$8 sps:$4 sm:$0xff]  }
  0xe5   :  { %v152_v25 = vadd.f32 %v151_v23, %v61_v5  ;;  %436 = vmatprep.mubr.bf16.mxu1 %v193_v21  ;;  %v181_v32 = vmax.f32 %v150_v24, 0.0  ;;  %v1725_v21 = vld [vmem:[#allocation2 + $0x140] ss:$8 sps:$4 sm:$0xff]   ;;  %v1728_v23 = vld [vmem:[#allocation2 + $0x130] ss:$8 sps:$4 sm:$0xff]  }
  0xe6   :  { %v153_v28 = vpop.f32.mrf.mxu0  ;;  %437 = vmatmul.mubr.bf16.vlgmr.msra.gmra.mxu1 %v192_v22  ;;  %v1730_v22 = vld [vmem:[#allocation2 + $0x134] ss:$8 sps:$4 sm:$0xff]   ;;  %v232_v24 = vld [vmem:[%s2183_s4] sm:$0x3] }
  0xe7   :  { %v154_v29 = vadd.f32 %v153_v28, %v65_v4  ;;  %v182_v30 = vmax.f32 %v152_v25, 0.0  ;;  %1068 = vmatpush1.bf16.msra.mxu1 %v1716_v13  ;;  %v2001_v26 = vrot.slane %v232_v24, %v1966_v63  ;;  %v237_v28 = vrot.slane %v232_v24, %v1968_v1 }
  0xe8   :  { %v157_v31 = vpop.f32.mrf.mxu0  ;;  %1069 = vmatprep.subr.bf16.mxu1 %v1721_v15 }
  0xe9   :  { %v183_v33 = vmax.f32 %v154_v29, 0.0  ;;  %v194_v38 = vpack.c.bf16 %v182_v30, %v180_v35  ;;  %v158_v42 = vadd.f32 %v157_v31, %v61_v5 }
  0xea   :  { %v159_v36 = vpop.f32.mrf.mxu0 }
  0xeb   :  { %v195_v37 = vpack.c.bf16 %v183_v33, %v181_v32  ;;  %v160_v40 = vadd.f32 %v159_v36, %v65_v4  ;;  %v184_v49 = vmax.f32 %v158_v42, 0.0  ;;  %1070 = vmatpush1.bf16.msra.mxu1 %v1719_v16 }
  0xec   :  { %v161_v39 = vpop.f32.mrf.mxu0  ;;  %1071 = vmatprep.subr.bf16.mxu1 %v1724_v17 }
  0xed   :  { %v162_v41 = vadd.f32 %v161_v39, %v61_v5  ;;  %446 = vmatprep.mubr.bf16.mxu1 %v195_v37  ;;  %v185_v47 = vmax.f32 %v160_v40, 0.0  ;;  %v1460_v39 = vcombine.low %v1456_v10, %v1456_v10 }
  0xee   :  { %v163_v43 = vpop.f32.mrf.mxu0  ;;  %447 = vmatmul.mubr.bf16.gmra.mxu1 %v194_v38 }
  0xef   :  { %v164_v44 = vadd.f32 %v163_v43, %v65_v4  ;;  %v186_v45 = vmax.f32 %v162_v41, 0.0  ;;  %1072 = vmatpush1.bf16.msra.mxu1 %v1722_v18 }
  0xf0   :  { %v167_v46 = vpop.f32.mrf.mxu0  ;;  %1073 = vmatprep.subr.bf16.mxu1 %v1727_v20 }
  0xf1   :  { %v187_v48 = vmax.f32 %v164_v44, 0.0  ;;  %v196_v52 = vpack.c.bf16 %v186_v45, %v184_v49  ;;  %v168_v56 = vadd.f32 %v167_v46, %v61_v5 }
  0xf2   :  { %v169_v50 = vpop.f32.mrf.mxu0 }
  0xf3   :  { %v197_v51 = vpack.c.bf16 %v187_v48, %v185_v47  ;;  %v170_v54 = vadd.f32 %v169_v50, %v65_v4  ;;  %v188_v62 = vmax.f32 %v168_v56, 0.0  ;;  %1074 = vmatpush1.bf16.msra.mxu1 %v1725_v21  ;;  %v759_v47 = vsel %vm96_vm0, %v1460_v39, 0  ;;  %v1715_v48 = vld [vmem:[%s2180_s1 + $0x1c] ss:$8 sps:$4 sm:$0xff]  }
  0xf4   :  { %v171_v53 = vpop.f32.mrf.mxu0  ;;  %1075 = vmatprep.subr.bf16.mxu1 %v1730_v22  ;;  %v1751_v39 = vld [vmem:[#allocation2 + $0x1c4] ss:$8 sps:$4 sm:$0xff]  }
  0xf5   :  { %v172_v55 = vadd.f32 %v171_v53, %v61_v5  ;;  %456 = vmatprep.mubr.bf16.mxu1 %v197_v51  ;;  %v189_v60 = vmax.f32 %v170_v54, 0.0  ;;  %v1708_v5 = vld [vmem:[%s2184_s5 + $0x8] sm:$0xff]   ;;  %v1713_v54 = vld [vmem:[%s2180_s1 + $0x18] ss:$8 sps:$4 sm:$0xff]  }
  0xf6   :  { %v173_v57 = vpop.f32.mrf.mxu0  ;;  %457 = vmatmul.mubr.bf16.gmra.mxu1 %v196_v52 }
  0xf7   :  { %v174_v58 = vadd.f32 %v173_v57, %v65_v4  ;;  %v190_v59 = vmax.f32 %v172_v55, 0.0  ;;  %v1707_v4 = vld [vmem:[%s2184_s5 + $0x48] sm:$0xff]   ;;  %1076 = vmatpush1.bf16.msra.mxu1 %v1728_v23 }
  0xf8   :  { %1570 = vmatprep.subr.bf16.mxu0 %v1707_v4 }
  0xf9   :  { %v191_v61 = vmax.f32 %v174_v58, 0.0  ;;  %v198_v3 = vpack.c.bf16 %v190_v59, %v188_v62  ;;  %1571 = vmatpush3.bf16.msra.mxu0 %v1708_v5 }
  0xfa   :  { %1572 = vmatprep.subr.bf16.mxu0 %v1709_v8 }
  0xfb   :  { %v199_v2 = vpack.c.bf16 %v191_v61, %v189_v60 }
  0xfd   :  { %466 = vmatprep.mubr.bf16.mxu1 %v199_v2  ;;  %1573 = vmatpush3.bf16.msra.mxu0 %v1710_v9 }
  0xfe   :  { %467 = vmatmul.mubr.bf16.gmra.mxu1 %v198_v3  ;;  %1462 = vmatprep.subr.msk.bf16.mxu0 %vm96_vm0, %v1461_v11 }
 0x1a6   :  { %v438_v25 = vpop.f32.mrf.mxu1 }
 0x1a7   :  { %v439_v33 = vadd.f32 %v438_v25, %v237_v28 }
 0x1a8   :  { %v440_v29 = vpop.f32.mrf.mxu1 }
 0x1a9   :  { %v441_v31 = vadd.f32 %v440_v29, %v2001_v26  ;;  %v477_v42 = vmax.f32 %v439_v33, 0.0  ;;  %v1734_v33 = vld [vmem:[#allocation2 + $0x110] ss:$8 sps:$4 sm:$0xff]  }
 0x1aa   :  { %v442_v30 = vpop.f32.mrf.mxu1 }
 0x1ab   :  { %v443_v32 = vadd.f32 %v442_v30, %v237_v28  ;;  %v478_v40 = vmax.f32 %v441_v31, 0.0 }
 0x1ac   :  { %v444_v35 = vpop.f32.mrf.mxu1 }
 0x1ad   :  { %v445_v36 = vadd.f32 %v444_v35, %v2001_v26  ;;  %v479_v37 = vmax.f32 %v443_v32, 0.0  ;;  %v1739_v35 = vld [vmem:[#allocation2 + $0x104] ss:$8 sps:$4 sm:$0xff]  }
 0x1ae   :  { %v448_v38 = vpop.f32.mrf.mxu1 }
 0x1af   :  { %v480_v41 = vmax.f32 %v445_v36, 0.0  ;;  %v493_v45 = vpack.c.bf16 %v479_v37, %v477_v42  ;;  %v449_v51 = vadd.f32 %v448_v38, %v237_v28  ;;  %v1742_v36 = vld [vmem:[#allocation2 + $0x1f4] ss:$8 sps:$4 sm:$0xff]   ;;  %v1740_v37 = vld [vmem:[#allocation2 + $0x1f0] ss:$8 sps:$4 sm:$0xff]  }
 0x1b0   :  { %v450_v43 = vpop.f32.mrf.mxu1  ;;  %v1746_v38 = vld [vmem:[#allocation2 + $0x1d0] ss:$8 sps:$4 sm:$0xff]  }
 0x1b1   :  { %v494_v44 = vpack.c.bf16 %v480_v41, %v478_v40  ;;  %v451_v49 = vadd.f32 %v450_v43, %v2001_v26  ;;  %v481_v59 = vmax.f32 %v449_v51, 0.0  ;;  %v1749_v40 = vld [vmem:[#allocation2 + $0x1c0] ss:$8 sps:$4 sm:$0xff]   ;;  %v1754_v41 = vld [vmem:[#allocation2 + $0x1b4] ss:$8 sps:$4 sm:$0xff]  }
 0x1b2   :  { %v452_v46 = vpop.f32.mrf.mxu1  ;;  %v1752_v42 = vld [vmem:[#allocation2 + $0x1b0] ss:$8 sps:$4 sm:$0xff]   ;;  %v1757_v43 = vld [vmem:[#allocation2 + $0x1a4] ss:$8 sps:$4 sm:$0xff]  }
 0x1b3   :  { %v453_v50 = vadd.f32 %v452_v46, %v237_v28  ;;  %668 = vmatprep.mubr.bf16.mxu0 %v494_v44  ;;  %v482_v57 = vmax.f32 %v451_v49, 0.0  ;;  %v1755_v44 = vld [vmem:[#allocation2 + $0x1a0] ss:$8 sps:$4 sm:$0xff]   ;;  %v1758_v46 = vld [vmem:[#allocation2 + $0x190] ss:$8 sps:$4 sm:$0xff]  }
 0x1b4   :  { %v454_v52 = vpop.f32.mrf.mxu1  ;;  %669 = vmatmul.mubr.bf16.vlgmr.msra.gmra.mxu0 %v493_v45  ;;  %v1760_v45 = vld [vmem:[#allocation2 + $0x194] ss:$8 sps:$4 sm:$0xff]  }
 0x1b5   :  { %v455_v53 = vadd.f32 %v454_v52, %v2001_v26  ;;  %777 = vmatpush1.bf16.msra.mxu0 %v759_v47  ;;  %v483_v55 = vmax.f32 %v453_v50, 0.0  ;;  %v1763_v47 = vld [vmem:[#allocation2 + $0x184] ss:$8 sps:$4 sm:$0xff]   ;;  %v1764_v49 = vld [vmem:[%s2184_s5 + $0xf8] sm:$0xff]   ;;  %v1766_v51 = vld [vmem:[%s2184_s5 + $0xf0] sm:$0xff]  }
 0x1b6   :  { %v458_v56 = vpop.f32.mrf.mxu1  ;;  %778 = vmatprep.subr.bf16.mxu0 %v1715_v48  ;;  %v1761_v48 = vld [vmem:[#allocation2 + $0x180] ss:$8 sps:$4 sm:$0xff]   ;;  %v1765_v50 = vld [vmem:[%s2184_s5 + $0xb8] sm:$0xff]   ;;  %v1767_v52 = vld [vmem:[%s2184_s5 + $0xb0] sm:$0xff]  }
 0x1b7   :  { %v484_v58 = vmax.f32 %v455_v53, 0.0  ;;  %v495_v62 = vpack.c.bf16 %v483_v55, %v481_v59  ;;  %v459_v7 = vadd.f32 %v458_v56, %v237_v28  ;;  %v1768_v53 = vld [vmem:[%s2184_s5 + $0xe8] sm:$0xff]   ;;  %v1770_v55 = vld [vmem:[%s2184_s5 + $0xe0] sm:$0xff]  }
 0x1b8   :  { %v460_v60 = vpop.f32.mrf.mxu1  ;;  %v1771_v56 = vld [vmem:[%s2184_s5 + $0xa0] sm:$0xff]  }
 0x1b9   :  { %v496_v61 = vpack.c.bf16 %v484_v58, %v482_v57  ;;  %779 = vmatpush1.bf16.msra.mxu0 %v1713_v54  ;;  %v461_v3 = vadd.f32 %v460_v60, %v2001_v26  ;;  %v485_v13 = vmax.f32 %v459_v7, 0.0  ;;  %v1769_v54 = vld [vmem:[%s2184_s5 + $0xa8] sm:$0xff]   ;;  %v1772_v57 = vld [vmem:[%s2184_s5 + $0xd8] sm:$0xff]   ;;  %v1437_v60 = vld [vmem:[%s2185_s6] ss:$0 sm:$0xff] }
 0x1ba   :  { %v462_v2 = vpop.f32.mrf.mxu1  ;;  %1598 = vmatprep.subr.bf16.mxu0 %v1764_v49  ;;  %v1773_v58 = vld [vmem:[%s2184_s5 + $0x98] sm:$0xff]  }
 0x1bb   :  { %v463_v6 = vadd.f32 %v462_v2, %v237_v28  ;;  %676 = vmatprep.mubr.bf16.mxu0 %v496_v61  ;;  %v486_v10 = vmax.f32 %v461_v3, 0.0 }
 0x1bc   :  { %v464_v4 = vpop.f32.mrf.mxu1  ;;  %677 = vmatmul.mubr.bf16.gmra.mxu0 %v495_v62 }
 0x1bd   :  { %v465_v5 = vadd.f32 %v464_v4, %v2001_v26  ;;  %v487_v8 = vmax.f32 %v463_v6, 0.0 }
 0x1be   :  { %v468_v9 = vpop.f32.mrf.mxu1 }
 0x1bf   :  { %v488_v11 = vmax.f32 %v465_v5, 0.0  ;;  %v497_v16 = vpack.c.bf16 %v487_v8, %v485_v13  ;;  %v469_v21 = vadd.f32 %v468_v9, %v237_v28 }
 0x1c0   :  { %v470_v14 = vpop.f32.mrf.mxu1 }
 0x1c1   :  { %v498_v15 = vpack.c.bf16 %v488_v11, %v486_v10  ;;  %v471_v18 = vadd.f32 %v470_v14, %v2001_v26  ;;  %v489_v30 = vmax.f32 %v469_v21, 0.0 }
 0x1c2   :  { %v472_v17 = vpop.f32.mrf.mxu1 }
 0x1c3   :  { %v473_v20 = vadd.f32 %v472_v17, %v237_v28  ;;  %684 = vmatprep.mubr.bf16.mxu0 %v498_v15  ;;  %v490_v25 = vmax.f32 %v471_v18, 0.0  ;;  %v1731_v28 = vld [vmem:[#allocation2 + $0x120] ss:$8 sps:$4 sm:$0xff]  }
 0x1c4   :  { %v474_v22 = vpop.f32.mrf.mxu1  ;;  %685 = vmatmul.mubr.bf16.gmra.mxu0 %v497_v16 }
 0x1c5   :  { %v475_v23 = vadd.f32 %v474_v22, %v2001_v26  ;;  %v491_v24 = vmax.f32 %v473_v20, 0.0  ;;  %v1733_v26 = vld [vmem:[#allocation2 + $0x124] ss:$8 sps:$4 sm:$0xff]  }
 0x1c6   :  { %1077 = vmatprep.subr.bf16.mxu1 %v1733_v26 }
 0x1c7   :  { %v492_v29 = vmax.f32 %v475_v23, 0.0  ;;  %v499_v32 = vpack.c.bf16 %v491_v24, %v489_v30  ;;  %1078 = vmatpush1.bf16.msra.mxu1 %v1731_v28 }
 0x1c9   :  { %v500_v31 = vpack.c.bf16 %v492_v29, %v490_v25 }
 0x1cb   :  { %692 = vmatprep.mubr.bf16.mxu0 %v500_v31 }
 0x1cc   :  { %693 = vmatmul.mubr.bf16.gmra.mxu0 %v499_v32 }
 0x1cd   :  { %796 = vmatprep.mubr.bf16.mxu0 %v1837_v0 }
 0x1d4   :  { %1463 = vmatmul.mubr.msk.bf16.vlgmr.msra.gmra.mxu0 %vm83_vm1, %v1899_v12  ;;  %v1736_v12 = vld [vmem:[#allocation2 + $0x114] ss:$8 sps:$4 sm:$0xff]  }
 0x1d5   :  { %806 = vmatprep.mubr.bf16.mxu0 %v1837_v0  ;;  %1079 = vmatprep.subr.bf16.mxu1 %v1736_v12 }
 0x1d6   :  { %1080 = vmatpush1.bf16.msra.mxu1 %v1734_v33  ;;  %1599 = vmatpush3.bf16.msra.mxu0 %v1765_v50 }
 0x1d7   :  { %1081 = vmatprep.subr.bf16.mxu1 %v1739_v35  ;;  %1600 = vmatprep.subr.bf16.mxu0 %v1766_v51 }
 0x1da   :  { %1601 = vmatpush3.bf16.msra.mxu0 %v1767_v52 }
 0x1db   :  { %1602 = vmatprep.subr.bf16.mxu0 %v1768_v53 }
 0x1dc   :  { %1464 = vmatmul.mubr.msk.bf16.gmra.mxu0 %vm83_vm1, %v1910_v19  ;;  %v1737_v19 = vld [vmem:[#allocation2 + $0x100] ss:$8 sps:$4 sm:$0xff]  }
 0x1dd   :  { %816 = vmatprep.mubr.bf16.mxu0 %v1837_v0  ;;  %1082 = vmatpush1.bf16.msra.mxu1 %v1737_v19 }
 0x1de   :  { %1083 = vmatprep.subr.bf16.mxu1 %v1742_v36  ;;  %1603 = vmatpush3.bf16.msra.mxu0 %v1769_v54 }
 0x1df   :  { %1604 = vmatprep.subr.bf16.mxu0 %v1770_v55 }
 0x1e1   :  { %1084 = vmatpush2.bf16.msra.mxu1 %v1740_v37 }
 0x1e2   :  { %1605 = vmatpush3.bf16.msra.mxu0 %v1771_v56 }
 0x1e3   :  { %1606 = vmatprep.subr.bf16.mxu0 %v1772_v57 }
 0x1e4   :  { %1465 = vmatmul.mubr.msk.bf16.gmra.mxu0 %vm83_vm1, %v1921_v27  ;;  %v1743_v27 = vld [vmem:[#allocation2 + $0x1e0] ss:$8 sps:$4 sm:$0xff]  }
 0x1e5   :  { %826 = vmatprep.mubr.bf16.mxu0 %v1837_v0  ;;  %v1745_v0 = vld [vmem:[#allocation2 + $0x1e4] ss:$8 sps:$4 sm:$0xff]  }
 0x1e6   :  { %1085 = vmatprep.subr.bf16.mxu1 %v1745_v0  ;;  %1607 = vmatpush3.bf16.msra.mxu0 %v1773_v58  ;;  %v1457_v0 = vld [vmem:[%s2181_s2 + $0x2] sm:$0x3] }
 0x1e7   :  { %1086 = vmatpush2.bf16.msra.mxu1 %v1743_v27 }
 0x1ec   :  { %1466 = vmatmul.mubr.msk.bf16.gmra.mxu0 %vm83_vm1, %v1932_v34  ;;  %v1748_v34 = vld [vmem:[#allocation2 + $0x1d4] ss:$8 sps:$4 sm:$0xff]  }
 0x1ed   :  { %1087 = vmatprep.subr.bf16.mxu1 %v1748_v34 }
 0x1ee   :  { %1088 = vmatpush2.bf16.msra.mxu1 %v1746_v38 }
 0x1ef   :  { %1089 = vmatprep.subr.bf16.mxu1 %v1751_v39 }
 0x1f2   :  { %1090 = vmatpush2.bf16.msra.mxu1 %v1749_v40  ;;  %v2080_v40 = vrot.slane %v1457_v0, %v1966_v63 }
 0x1f3   :  { %1091 = vmatprep.subr.bf16.mxu1 %v1754_v41  ;;  %v2083_v41 = vrot.slane %v1457_v0, %v1968_v1 }
 0x1f6   :  { %1092 = vmatpush2.bf16.msra.mxu1 %v1752_v42 }
 0x1f7   :  { %1093 = vmatprep.subr.bf16.mxu1 %v1757_v43 }
 0x1fa   :  { %1094 = vmatpush2.bf16.msra.mxu1 %v1755_v44 }
 0x1fb   :  { %1095 = vmatprep.subr.bf16.mxu1 %v1760_v45 }
 0x1fe   :  { %1096 = vmatpush2.bf16.msra.mxu1 %v1758_v46 }
 0x1ff   :  { %1097 = vmatprep.subr.bf16.mxu1 %v1763_v47 }
 0x202   :  { %1098 = vmatpush2.bf16.msra.mxu1 %v1761_v48 }
 0x274   :  { %v1574_v59 = vpop.f32.mrf.mxu0 }
 0x276   :  { %v1575_v61 = vpop.f32.mrf.mxu0 }
 0x277   :  { %v1576_v62 = vadd.f32 %v1575_v61, %v1574_v59 }
 0x278   :  { %v1577_v2 = vpop.f32.mrf.mxu0 }
 0x279   :  { %v671_v3 = vadd.f32 %v1576_v62, %v1437_v60 }
 0x27a   :  { %v1578_v6 = vpop.f32.mrf.mxu0 }
 0x27b   :  { %1780 = vtanh.f32 %v671_v3  ;;  %v1579_v7 = vadd.f32 %v1578_v6, %v1577_v2 }
 0x27c   :  { %v1580_v4 = vpop.f32.mrf.mxu0 }
 0x27d   :  { %v674_v5 = vadd.f32 %v1579_v7, %v1437_v60 }
 0x27e   :  { %v1581_v8 = vpop.f32.mrf.mxu0 }
 0x27f   :  { %1782 = vtanh.f32 %v674_v5  ;;  %v1582_v9 = vadd.f32 %v1581_v8, %v1580_v4 }
 0x280   :  { %v1583_v10 = vpop.f32.mrf.mxu0 }
 0x281   :  { %v679_v11 = vadd.f32 %v1582_v9, %v1437_v60 }
 0x282   :  { %v1584_v13 = vpop.f32.mrf.mxu0 }
 0x283   :  { %1784 = vtanh.f32 %v679_v11  ;;  %v1585_v14 = vadd.f32 %v1584_v13, %v1583_v10 }
 0x284   :  { %v1586_v15 = vpop.f32.mrf.mxu0 }
 0x285   :  { %v682_v16 = vadd.f32 %v1585_v14, %v1437_v60 }
 0x286   :  { %v1587_v17 = vpop.f32.mrf.mxu0 }
 0x287   :  { %1786 = vtanh.f32 %v682_v16  ;;  %v1588_v18 = vadd.f32 %v1587_v17, %v1586_v15 }
 0x288   :  { %v1781_v20 = vpop.eup %1780  ;;  %v1589_v21 = vpop.f32.mrf.mxu0 }
 0x289   :  { %v709_v22 = vmul.f32 2.0, %v1781_v20  ;;  %v687_v23 = vadd.f32 %v1588_v18, %v1437_v60 }
 0x28a   :  { %v1590_v24 = vpop.f32.mrf.mxu0 }
 0x28b   :  { %718 = vst.msk [vmem:[%s2186_s7] sm:$0xff] %vm717_vm2, %v709_v22  ;;  %1788 = vtanh.f32 %v687_v23  ;;  %v1591_v25 = vadd.f32 %v1590_v24, %v1589_v21 }
 0x28c   :  { %v1783_v29 = vpop.eup %1782  ;;  %v1592_v30 = vpop.f32.mrf.mxu0 }
 0x28d   :  { %v710_v31 = vmul.f32 2.0, %v1783_v29  ;;  %v690_v32 = vadd.f32 %v1591_v25, %v1437_v60 }
 0x28e   :  { %v1593_v26 = vpop.f32.mrf.mxu0 }
 0x28f   :  { %719 = vst.msk [vmem:[%s2186_s7 + $0x8] sm:$0xff] %vm717_vm2, %v710_v31  ;;  %1790 = vtanh.f32 %v690_v32  ;;  %v1594_v28 = vadd.f32 %v1593_v26, %v1592_v30 }
 0x290   :  { %v1785_v12 = vpop.eup %1784  ;;  %v1595_v33 = vpop.f32.mrf.mxu0 }
 0x291   :  { %v711_v35 = vmul.f32 2.0, %v1785_v12  ;;  %v695_v19 = vadd.f32 %v1594_v28, %v1437_v60 }
 0x292   :  { %v1596_v36 = vpop.f32.mrf.mxu0 }
 0x293   :  { %720 = vst.msk [vmem:[%s2186_s7 + $0x10] sm:$0xff] %vm717_vm2, %v711_v35  ;;  %1792 = vtanh.f32 %v695_v19  ;;  %v1597_v37 = vadd.f32 %v1596_v36, %v1595_v33 }
 0x294   :  { %v1787_v27 = vpop.eup %1786  ;;  %v798_v34 = vpop.f32.mrf.mxu0 }
 0x295   :  { %v712_v38 = vmul.f32 2.0, %v1787_v27  ;;  %v698_v39 = vadd.f32 %v1597_v37, %v1437_v60  ;;  %v799_v48 = vadd.f32 %v798_v34, %v2083_v41 }
 0x296   :  { %v800_v42 = vpop.f32.mrf.mxu0 }
 0x297   :  { %721 = vst.msk [vmem:[%s2186_s7 + $0x18] sm:$0xff] %vm717_vm2, %v712_v38  ;;  %1794 = vtanh.f32 %v698_v39  ;;  %v801_v46 = vadd.f32 %v800_v42, %v2080_v40  ;;  %v837_v57 = vmax.f32 %v799_v48, 0.0  ;;  %v1779_v48 = vld [vmem:[%s2184_s5 + $0x80] sm:$0xff]  }
 0x298   :  { %v1789_v43 = vpop.eup %1788  ;;  %v802_v44 = vpop.f32.mrf.mxu0 }
 0x299   :  { %v713_v45 = vmul.f32 2.0, %v1789_v43  ;;  %v803_v47 = vadd.f32 %v802_v44, %v2083_v41  ;;  %v838_v55 = vmax.f32 %v801_v46, 0.0  ;;  %v1777_v46 = vld [vmem:[%s2184_s5 + $0x88] sm:$0xff]  }
 0x29a   :  { %v804_v49 = vpop.f32.mrf.mxu0 }
 0x29b   :  { %722 = vst.msk [vmem:[%s2186_s7 + $0x20] sm:$0xff] %vm717_vm2, %v713_v45  ;;  %v805_v50 = vadd.f32 %v804_v49, %v2080_v40  ;;  %v839_v52 = vmax.f32 %v803_v47, 0.0  ;;  %v1774_v45 = vld [vmem:[%s2184_s5 + $0xd0] sm:$0xff]   ;;  %v1778_v47 = vld [vmem:[%s2184_s5 + $0xc0] sm:$0xff]  }
 0x29c   :  { %v1791_v51 = vpop.eup %1790  ;;  %v808_v53 = vpop.f32.mrf.mxu0  ;;  %1608 = vmatprep.subr.bf16.mxu0 %v1774_v45  ;;  %v1467_v49 = vld [vmem:[%s2183_s4 + $0x2] sm:$0x3] }
 0x29d   :  { %v714_v54 = vmul.f32 2.0, %v1791_v51  ;;  %v840_v56 = vmax.f32 %v805_v50, 0.0  ;;  %v853_v61 = vpack.c.bf16 %v839_v52, %v837_v57  ;;  %v809_v7 = vadd.f32 %v808_v53, %v2083_v41 }
 0x29e   :  { %v810_v58 = vpop.f32.mrf.mxu0  ;;  %v904_v51 = vrot.slane %v1467_v49, %v1966_v63  ;;  %v900_v52 = vrot.slane %v1467_v49, %v1968_v1 }
 0x29f   :  { %723 = vst.msk [vmem:[%s2186_s7 + $0x28] sm:$0xff] %vm717_vm2, %v714_v54  ;;  %v854_v59 = vpack.c.bf16 %v840_v56, %v838_v55  ;;  %v811_v3 = vadd.f32 %v810_v58, %v2080_v40  ;;  %v841_v15 = vmax.f32 %v809_v7, 0.0 }
 0x2a0   :  { %v1793_v60 = vpop.eup %1792  ;;  %v812_v62 = vpop.f32.mrf.mxu0 }
 0x2a1   :  { %v715_v2 = vmul.f32 2.0, %v1793_v60  ;;  %v813_v6 = vadd.f32 %v812_v62, %v2083_v41  ;;  %1099 = vmatprep.mubr.bf16.mxu1 %v854_v59  ;;  %v842_v13 = vmax.f32 %v811_v3, 0.0 }
 0x2a2   :  { %v814_v4 = vpop.f32.mrf.mxu0  ;;  %1100 = vmatmul.mubr.bf16.vlgmr.msra.gmra.mxu1 %v853_v61 }
 0x2a3   :  { %724 = vst.msk [vmem:[%s2186_s7 + $0x30] sm:$0xff] %vm717_vm2, %v715_v2  ;;  %v815_v5 = vadd.f32 %v814_v4, %v2080_v40  ;;  %v843_v9 = vmax.f32 %v813_v6, 0.0 }
 0x2a4   :  { %v1795_v8 = vpop.eup %1794  ;;  %v818_v10 = vpop.f32.mrf.mxu0 }
 0x2a5   :  { %v716_v11 = vmul.f32 2.0, %v1795_v8  ;;  %v844_v14 = vmax.f32 %v815_v5, 0.0  ;;  %v855_v18 = vpack.c.bf16 %v843_v9, %v841_v15  ;;  %v819_v23 = vadd.f32 %v818_v10, %v2083_v41 }
 0x2a6   :  { %v820_v16 = vpop.f32.mrf.mxu0 }
 0x2a7   :  { %725 = vst.msk [vmem:[%s2186_s7 + $0x38] sm:$0xff] %vm717_vm2, %v716_v11  ;;  %v856_v17 = vpack.c.bf16 %v844_v14, %v842_v13  ;;  %v821_v21 = vadd.f32 %v820_v16, %v2080_v40  ;;  %v845_v26 = vmax.f32 %v819_v23, 0.0 }
 0x2a8   :  { %v822_v20 = vpop.f32.mrf.mxu0 }
 0x2a9   :  { %v823_v22 = vadd.f32 %v822_v20, %v2083_v41  ;;  %1109 = vmatprep.mubr.bf16.mxu1 %v856_v17  ;;  %v846_v31 = vmax.f32 %v821_v21, 0.0 }
 0x2aa   :  { %v824_v24 = vpop.f32.mrf.mxu0  ;;  %1110 = vmatmul.mubr.bf16.gmra.mxu1 %v855_v18 }
 0x2ab   :  { %v825_v25 = vadd.f32 %v824_v24, %v2080_v40  ;;  %v847_v29 = vmax.f32 %v823_v22, 0.0 }
 0x2ac   :  { %v828_v30 = vpop.f32.mrf.mxu0 }
 0x2ad   :  { %v848_v32 = vmax.f32 %v825_v25, 0.0  ;;  %v857_v33 = vpack.c.bf16 %v847_v29, %v845_v26  ;;  %v829_v37 = vadd.f32 %v828_v30, %v2083_v41 }
 0x2ae   :  { %v830_v28 = vpop.f32.mrf.mxu0 }
 0x2af   :  { %v858_v12 = vpack.c.bf16 %v848_v32, %v846_v31  ;;  %v831_v19 = vadd.f32 %v830_v28, %v2080_v40  ;;  %v849_v42 = vmax.f32 %v829_v37, 0.0 }
 0x2b0   :  { %v832_v35 = vpop.f32.mrf.mxu0 }
 0x2b1   :  { %v833_v36 = vadd.f32 %v832_v35, %v2083_v41  ;;  %1119 = vmatprep.mubr.bf16.mxu1 %v858_v12  ;;  %v850_v38 = vmax.f32 %v831_v19, 0.0  ;;  %v1775_v41 = vld [vmem:[%s2184_s5 + $0x90] sm:$0xff]  }
 0x2b2   :  { %v834_v0 = vpop.f32.mrf.mxu0  ;;  %1120 = vmatmul.mubr.bf16.gmra.mxu1 %v857_v33  ;;  %1609 = vmatpush3.bf16.msra.mxu0 %v1775_v41 }
 0x2b3   :  { %v835_v27 = vadd.f32 %v834_v0, %v2080_v40  ;;  %v851_v34 = vmax.f32 %v833_v36, 0.0  ;;  %v1776_v40 = vld [vmem:[%s2184_s5 + $0xc8] sm:$0xff]  }
 0x2b4   :  { %1610 = vmatprep.subr.bf16.mxu0 %v1776_v40  ;;  %v1533_v40 = vld [vmem:[%s2185_s6 + $0x1] ss:$0 sm:$0xff] }
 0x2b5   :  { %v852_v39 = vmax.f32 %v835_v27, 0.0  ;;  %v859_v44 = vpack.c.bf16 %v851_v34, %v849_v42 }
 0x2b6   :  { %1611 = vmatpush3.bf16.msra.mxu0 %v1777_v46 }
 0x2b7   :  { %v860_v43 = vpack.c.bf16 %v852_v39, %v850_v38  ;;  %1612 = vmatprep.subr.bf16.mxu0 %v1778_v47 }
 0x2b9   :  { %1129 = vmatprep.mubr.bf16.mxu1 %v860_v43 }
 0x2ba   :  { %1130 = vmatmul.mubr.bf16.gmra.mxu1 %v859_v44  ;;  %1613 = vmatpush3.bf16.msra.mxu0 %v1779_v48 }
 0x362   :  { %v1101_v50 = vpop.f32.mrf.mxu1 }
 0x363   :  { %v1102_v57 = vadd.f32 %v1101_v50, %v900_v52 }
 0x364   :  { %v1103_v53 = vpop.f32.mrf.mxu1 }
 0x365   :  { %v1104_v55 = vadd.f32 %v1103_v53, %v904_v51  ;;  %v1140_v3 = vmax.f32 %v1102_v57, 0.0 }
 0x366   :  { %v1105_v54 = vpop.f32.mrf.mxu1 }
 0x367   :  { %v1106_v56 = vadd.f32 %v1105_v54, %v900_v52  ;;  %v1141_v62 = vmax.f32 %v1104_v55, 0.0 }
 0x368   :  { %v1107_v58 = vpop.f32.mrf.mxu1 }
 0x369   :  { %v1108_v59 = vadd.f32 %v1107_v58, %v904_v51  ;;  %v1142_v60 = vmax.f32 %v1106_v56, 0.0 }
 0x36a   :  { %v1111_v61 = vpop.f32.mrf.mxu1 }
 0x36b   :  { %v1143_v2 = vmax.f32 %v1108_v59, 0.0  ;;  %v1156_v4 = vpack.c.bf16 %v1142_v60, %v1140_v3  ;;  %v1112_v1 = vadd.f32 %v1111_v61, %v900_v52 }
 0x36c   :  { %v1113_v6 = vpop.f32.mrf.mxu1 }
 0x36d   :  { %v1157_v7 = vpack.c.bf16 %v1143_v2, %v1141_v62  ;;  %v1114_v8 = vadd.f32 %v1113_v6, %v904_v51  ;;  %v1144_v16 = vmax.f32 %v1112_v1, 0.0 }
 0x36e   :  { %v1115_v5 = vpop.f32.mrf.mxu1 }
 0x36f   :  { %v1116_v63 = vadd.f32 %v1115_v5, %v900_v52  ;;  %1333 = vmatprep.mubr.bf16.mxu0 %v1157_v7  ;;  %v1145_v14 = vmax.f32 %v1114_v8, 0.0 }
 0x370   :  { %v1117_v9 = vpop.f32.mrf.mxu1  ;;  %1334 = vmatmul.mubr.bf16.vlgmr.msra.gmra.mxu0 %v1156_v4 }
 0x371   :  { %v1118_v10 = vadd.f32 %v1117_v9, %v904_v51  ;;  %v1146_v11 = vmax.f32 %v1116_v63, 0.0 }
 0x372   :  { %v1121_v13 = vpop.f32.mrf.mxu1 }
 0x373   :  { %v1147_v15 = vmax.f32 %v1118_v10, 0.0  ;;  %v1158_v20 = vpack.c.bf16 %v1146_v11, %v1144_v16  ;;  %v1122_v24 = vadd.f32 %v1121_v13, %v900_v52 }
 0x374   :  { %v1123_v17 = vpop.f32.mrf.mxu1 }
 0x375   :  { %v1159_v18 = vpack.c.bf16 %v1147_v15, %v1145_v14  ;;  %v1124_v22 = vadd.f32 %v1123_v17, %v904_v51  ;;  %v1148_v28 = vmax.f32 %v1122_v24, 0.0 }
 0x376   :  { %v1125_v21 = vpop.f32.mrf.mxu1 }
 0x377   :  { %v1126_v23 = vadd.f32 %v1125_v21, %v900_v52  ;;  %1341 = vmatprep.mubr.bf16.mxu0 %v1159_v18  ;;  %v1149_v32 = vmax.f32 %v1124_v22, 0.0 }
 0x378   :  { %v1127_v25 = vpop.f32.mrf.mxu1  ;;  %1342 = vmatmul.mubr.bf16.gmra.mxu0 %v1158_v20 }
 0x379   :  { %v1128_v29 = vadd.f32 %v1127_v25, %v904_v51  ;;  %v1150_v30 = vmax.f32 %v1126_v23, 0.0 }
 0x37a   :  { %v1131_v31 = vpop.f32.mrf.mxu1 }
 0x37b   :  { %v1151_v26 = vmax.f32 %v1128_v29, 0.0  ;;  %v1160_v35 = vpack.c.bf16 %v1150_v30, %v1148_v28  ;;  %v1132_v0 = vadd.f32 %v1131_v31, %v900_v52 }
 0x37c   :  { %v1133_v12 = vpop.f32.mrf.mxu1 }
 0x37d   :  { %v1161_v33 = vpack.c.bf16 %v1151_v26, %v1149_v32  ;;  %v1134_v36 = vadd.f32 %v1133_v12, %v904_v51  ;;  %v1152_v43 = vmax.f32 %v1132_v0, 0.0 }
 0x37e   :  { %v1135_v19 = vpop.f32.mrf.mxu1 }
 0x37f   :  { %v1136_v37 = vadd.f32 %v1135_v19, %v900_v52  ;;  %1349 = vmatprep.mubr.bf16.mxu0 %v1161_v33  ;;  %v1153_v39 = vmax.f32 %v1134_v36, 0.0 }
 0x380   :  { %v1137_v27 = vpop.f32.mrf.mxu1  ;;  %1350 = vmatmul.mubr.bf16.gmra.mxu0 %v1160_v35 }
 0x381   :  { %v1138_v34 = vadd.f32 %v1137_v27, %v904_v51  ;;  %v1154_v38 = vmax.f32 %v1136_v37, 0.0 }
 0x383   :  { %v1155_v42 = vmax.f32 %v1138_v34, 0.0  ;;  %v1162_v45 = vpack.c.bf16 %v1154_v38, %v1152_v43 }
 0x385   :  { %v1163_v44 = vpack.c.bf16 %v1155_v42, %v1153_v39 }
 0x387   :  { %1357 = vmatprep.mubr.bf16.mxu0 %v1163_v44 }
 0x388   :  { %1358 = vmatmul.mubr.bf16.gmra.mxu0 %v1162_v45 }
 0x430   :  { %v1614_v41 = vpop.f32.mrf.mxu0 }
 0x432   :  { %v1615_v46 = vpop.f32.mrf.mxu0 }
 0x433   :  { %v1616_v47 = vadd.f32 %v1615_v46, %v1614_v41 }
 0x434   :  { %v1617_v48 = vpop.f32.mrf.mxu0 }
 0x435   :  { %v1336_v49 = vadd.f32 %v1616_v47, %v1533_v40 }
 0x436   :  { %v1618_v50 = vpop.f32.mrf.mxu0 }
 0x437   :  { %1796 = vtanh.f32 %v1336_v49  ;;  %v1619_v51 = vadd.f32 %v1618_v50, %v1617_v48 }
 0x438   :  { %v1620_v52 = vpop.f32.mrf.mxu0 }
 0x439   :  { %v1339_v53 = vadd.f32 %v1619_v51, %v1533_v40 }
 0x43a   :  { %v1621_v54 = vpop.f32.mrf.mxu0 }
 0x43b   :  { %1798 = vtanh.f32 %v1339_v53  ;;  %v1622_v55 = vadd.f32 %v1621_v54, %v1620_v52 }
 0x43c   :  { %v1623_v56 = vpop.f32.mrf.mxu0 }
 0x43d   :  { %v1344_v57 = vadd.f32 %v1622_v55, %v1533_v40 }
 0x43e   :  { %v1624_v58 = vpop.f32.mrf.mxu0 }
 0x43f   :  { %1800 = vtanh.f32 %v1344_v57  ;;  %v1625_v59 = vadd.f32 %v1624_v58, %v1623_v56 }
 0x440   :  { %v1626_v60 = vpop.f32.mrf.mxu0 }
 0x441   :  { %v1347_v61 = vadd.f32 %v1625_v59, %v1533_v40 }
 0x442   :  { %v1627_v62 = vpop.f32.mrf.mxu0 }
 0x443   :  { %1802 = vtanh.f32 %v1347_v61  ;;  %v1628_v2 = vadd.f32 %v1627_v62, %v1626_v60 }
 0x444   :  { %v1797_v3 = vpop.eup %1796  ;;  %v1629_v6 = vpop.f32.mrf.mxu0 }
 0x445   :  { %v1374_v7 = vmul.f32 2.0, %v1797_v3  ;;  %v1352_v4 = vadd.f32 %v1628_v2, %v1533_v40 }
 0x446   :  { %v1630_v5 = vpop.f32.mrf.mxu0 }
 0x447   :  { %1550 = vst.msk [vmem:[%s2186_s7 + $0x40] sm:$0xff] %vm717_vm2, %v1374_v7  ;;  %1804 = vtanh.f32 %v1352_v4  ;;  %v1631_v8 = vadd.f32 %v1630_v5, %v1629_v6 }
 0x448   :  { %v1799_v63 = vpop.eup %1798  ;;  %v1632_v1 = vpop.f32.mrf.mxu0 }
 0x449   :  { %v1375_v9 = vmul.f32 2.0, %v1799_v63  ;;  %v1355_v10 = vadd.f32 %v1631_v8, %v1533_v40 }
 0x44a   :  { %v1633_v11 = vpop.f32.mrf.mxu0 }
 0x44b   :  { %1551 = vst.msk [vmem:[%s2186_s7 + $0x48] sm:$0xff] %vm717_vm2, %v1375_v9  ;;  %1806 = vtanh.f32 %v1355_v10  ;;  %v1634_v13 = vadd.f32 %v1633_v11, %v1632_v1 }
 0x44c   :  { %v1801_v14 = vpop.eup %1800  ;;  %v1635_v15 = vpop.f32.mrf.mxu0 }
 0x44d   :  { %v1376_v16 = vmul.f32 2.0, %v1801_v14  ;;  %v1360_v17 = vadd.f32 %v1634_v13, %v1533_v40 }
 0x44e   :  { %v1636_v18 = vpop.f32.mrf.mxu0 }
 0x44f   :  { %1552 = vst.msk [vmem:[%s2186_s7 + $0x50] sm:$0xff] %vm717_vm2, %v1376_v16  ;;  %1808 = vtanh.f32 %v1360_v17  ;;  %v1637_v20 = vadd.f32 %v1636_v18, %v1635_v15 }
 0x450   :  { %v1803_v21 = vpop.eup %1802 }
 0x451   :  { %v1377_v22 = vmul.f32 2.0, %v1803_v21  ;;  %v1363_v23 = vadd.f32 %v1637_v20, %v1533_v40 }
 0x453   :  { %1553 = vst.msk [vmem:[%s2186_s7 + $0x58] sm:$0xff] %vm717_vm2, %v1377_v22  ;;  %1810 = vtanh.f32 %v1363_v23 }
 0x454   :  { %v1805_v24 = vpop.eup %1804 }
 0x455   :  { %v1378_v25 = vmul.f32 2.0, %v1805_v24 }
 0x457   :  { %1554 = vst.msk [vmem:[%s2186_s7 + $0x60] sm:$0xff] %vm717_vm2, %v1378_v25 }
 0x458   :  { %v1807_v29 = vpop.eup %1806 }
 0x459   :  { %v1379_v30 = vmul.f32 2.0, %v1807_v29 }
 0x45b   :  { %1555 = vst.msk [vmem:[%s2186_s7 + $0x68] sm:$0xff] %vm717_vm2, %v1379_v30 }
 0x45c   :  { %v1809_v31 = vpop.eup %1808 }
 0x45d   :  { %v1380_v32 = vmul.f32 2.0, %v1809_v31 }
 0x45f   :  { %1556 = vst.msk [vmem:[%s2186_s7 + $0x70] sm:$0xff] %vm717_vm2, %v1380_v32 }
 0x460   :  { %v1811_v26 = vpop.eup %1810 }
 0x461   :  { %v1381_v28 = vmul.f32 2.0, %v1811_v26 }
 0x463   :  { %1557 = vst.msk [vmem:[%s2186_s7 + $0x78] sm:$0xff] %vm717_vm2, %v1381_v28 }
 0x464   :  { %1395 = vsyncpa [#allocation3], 1 }

</bundles_post_ra>
